<compile_context>
chip_gen: v7x
topology: tpu7x:2x2x1
jax: 0.10.0
libtpu: 0.0.40
codegen_flags: <defaults>
</compile_context>

<pallas_src>
import functools

import jax
import jax.numpy as jnp
from jax.experimental import pallas as pl
from jax.experimental.pallas import tpu as pltpu

_LANE = 128
_MAX_ROW_BLOCK = 2048   # 2048 x 128 f32 = 1 MiB per input buffer
_NUM_SHARDS = 2         # leading "parallel" grid axis (used by v7x megacore)


def _round_up(a, b):
    return (a + b - 1) // b * b


def _log_sum_kernel(x_ref, o_ref, *, rows_valid, row_block, blocks_per_shard):
    """Accumulate per-lane partial sums of log(x) into the (8,128) output block.

    Grid = (shard, block-within-shard). The output block index depends only on
    the shard axis, so it stays resident in VMEM across the inner reduction
    axis and acts as the accumulator.
    """
    c = pl.program_id(0)   # shard (parallel)
    i = pl.program_id(1)   # block within shard (arbitrary / reduction)

    @pl.when(i == 0)
    def _():
        o_ref[...] = jnp.zeros_like(o_ref)

    # Global block / row range covered by this step (unclamped; masking below
    # handles rows past the true end, including duplicate clamped blocks).
    gblock = c * blocks_per_shard + i
    row0 = gblock * row_block

    tile = x_ref[...].astype(jnp.float32)                        # (RB, 128)
    row_ids = row0 + jax.lax.broadcasted_iota(jnp.int32, tile.shape, 0)
    logx = jnp.where(row_ids < rows_valid, jnp.log(tile), 0.0)

    # Per-lane accumulation: (RB,128) -> (RB/8, 8, 128) -> VPU adds over axis 0.
    o_ref[...] += logx.reshape(-1, 8, o_ref.shape[-1]).sum(axis=0)


def log_loss(x, negation=True):
    """Pallas equivalent of Log_loss.forward: (-)sum(log(x)) -> scalar f32."""
    xf = jnp.reshape(x, (-1,))            # keep original dtype; cast in-kernel
    n = xf.shape[0]

    lane_pad = (-n) % _LANE
    if lane_pad:
        # Only to align to the 128-lane width (<=127 elements); log(1)=0 so it
        # never perturbs the sum. Lane-divisible inputs skip this copy entirely.
        xf = jnp.concatenate([xf, jnp.ones((lane_pad,), xf.dtype)])

    rows = xf.shape[0] // _LANE
    x2 = xf.reshape(rows, _LANE)          # (rows, 128) lane-dense slab

    row_block = min(_MAX_ROW_BLOCK, _round_up(rows, 8))
    num_blocks = pl.cdiv(rows, row_block)
    bps = pl.cdiv(num_blocks, _NUM_SHARDS)   # blocks per shard

    kernel = functools.partial(
        _log_sum_kernel,
        rows_valid=rows,
        row_block=row_block,
        blocks_per_shard=bps,
    )

    partials = pl.pallas_call(
        kernel,
        out_shape=jax.ShapeDtypeStruct((_NUM_SHARDS * 8, _LANE), jnp.float32),
        grid_spec=pltpu.PrefetchScalarGridSpec(
            num_scalar_prefetch=0,
            grid=(_NUM_SHARDS, bps),
            in_specs=[pl.BlockSpec(
                (row_block, _LANE),
                # Clamp so duplicate trailing blocks (when num_blocks doesn't
                # split evenly across shards) stay in-bounds; the in-kernel
                # row mask makes their contribution exactly zero.
                lambda c, i: (jnp.minimum(c * bps + i, num_blocks - 1), 0))],
            out_specs=pl.BlockSpec((8, _LANE), lambda c, i: (c, 0)),
        ),
        compiler_params=pltpu.CompilerParams(
            dimension_semantics=("parallel", "arbitrary")),
    )(x2)

    total = jnp.sum(partials)             # tiny final reduce over 2*8*128 f32
    return -total if negation else total


def _reference(x, negation=True):
    loss = jnp.sum(jnp.log(x.astype(jnp.float32)))
    return -loss if negation else loss


if __name__ == "__main__":
    key = jax.random.PRNGKey(0)
    # small shape consistent with a D2GAN discriminator output batch
    x = jax.random.uniform(key, (2, 4, 16, 16), dtype=jnp.float32,
                           minval=0.05, maxval=1.0)

    got_neg = jax.block_until_ready(log_loss(x, negation=True))
    got_pos = jax.block_until_ready(log_loss(x, negation=False))

    ref_neg = _reference(x, negation=True)
    ref_pos = _reference(x, negation=False)

    assert jnp.allclose(got_neg, ref_neg, rtol=1e-5, atol=1e-5), (got_neg, ref_neg)
    assert jnp.allclose(got_pos, ref_pos, rtol=1e-5, atol=1e-5), (got_pos, ref_pos)

    print("KERNEL_OK")
</pallas_src>

<mosaic_0001>
module attributes {stable_mosaic.version = 11 : i64} {
  func.func @_log_sum_kernel(%arg0: i32, %arg1: i32, %arg2: memref<16x128xf32, #tpu.memory_space<vmem>>, %arg3: memref<8x128xf32, #tpu.memory_space<vmem>>) attributes {dimension_semantics = [#tpu.dimension_semantics<parallel>, #tpu.dimension_semantics<arbitrary>], iteration_bounds = array<i64: 2, 1>, scalar_prefetch = 0 : i64, scratch_operands = 0 : i64, tpu.core_type = #tpu.core_type<tc>, window_params = [{transform_indices = @transform_0, window_bounds = array<i64: 16, 128>}, {transform_indices = @transform_1, window_bounds = array<i64: 8, 128>}]} {
    %c0_i32 = arith.constant 0 : i32
    %0 = arith.cmpi eq, %arg1, %c0_i32 : i32
    %1 = arith.extui %0 : i1 to i32
    %c0_i32_0 = arith.constant 0 : i32
    %2 = arith.cmpi ne, %1, %c0_i32_0 : i32
    scf.if %2 {
      %cst_8 = arith.constant 0.000000e+00 : f32
      %20 = vector.broadcast %cst_8 : f32 to vector<8x128xf32>
      %c0_9 = arith.constant 0 : index
      %c0_10 = arith.constant 0 : index
      %21 = vector.load %arg3[%c0_9, %c0_10] : memref<8x128xf32, #tpu.memory_space<vmem>>, vector<8x128xf32>
      tpu.vector_store %arg3[%c0_9, %c0_10], %20 {strides = array<i32>} : memref<8x128xf32, #tpu.memory_space<vmem>>, vector<8x128xf32>,
    } else {
    }
    %c1_i32 = arith.constant 1 : i32
    %3 = arith.muli %arg0, %c1_i32 : i32
    %4 = arith.addi %3, %arg1 : i32
    %c16_i32 = arith.constant 16 : i32
    %5 = arith.muli %4, %c16_i32 : i32
    %c0 = arith.constant 0 : index
    %c0_1 = arith.constant 0 : index
    %6 = vector.load %arg2[%c0, %c0_1] : memref<16x128xf32, #tpu.memory_space<vmem>>, vector<16x128xf32>
    %7 = tpu.iota {dimensions = array<i32: 0>} : vector<16x128xi32>
    %8 = vector.broadcast %5 : i32 to vector<16x128xi32>
    %9 = arith.addi %8, %7 : vector<16x128xi32>
    %c16_i32_2 = arith.constant 16 : i32
    %10 = vector.broadcast %c16_i32_2 : i32 to vector<16x128xi32>
    %11 = arith.cmpi slt, %9, %10 : vector<16x128xi32>
    %12 = math.log %6 : vector<16x128xf32>
    %cst = arith.constant 0.000000e+00 : f32
    %13 = vector.broadcast %cst : f32 to vector<16x128xf32>
    %14 = arith.select %11, %12, %13 : vector<16x128xi1>, vector<16x128xf32>
    %c0_3 = arith.constant 0 : index
    %c0_4 = arith.constant 0 : index
    %15 = vector.load %arg3[%c0_3, %c0_4] : memref<8x128xf32, #tpu.memory_space<vmem>>, vector<8x128xf32>
    %16 = vector.shape_cast %14 : vector<16x128xf32> to vector<2x8x128xf32>
    %cst_5 = arith.constant dense<0.000000e+00> : vector<8x128xf32>
    %17 = vector.multi_reduction <add>, %16, %cst_5 [0] : vector<2x8x128xf32> to vector<8x128xf32>
    %18 = arith.addf %15, %17 : vector<8x128xf32>
    %c0_6 = arith.constant 0 : index
    %c0_7 = arith.constant 0 : index
    %19 = vector.load %arg3[%c0_6, %c0_7] : memref<8x128xf32, #tpu.memory_space<vmem>>, vector<8x128xf32>
    tpu.vector_store %arg3[%c0_6, %c0_7], %18 {strides = array<i32>} : memref<8x128xf32, #tpu.memory_space<vmem>>, vector<8x128xf32>,
    return
  }
  func.func @transform_0(%arg0: i32, %arg1: i32) -> (i32, i32) {
    %c1_i32 = arith.constant 1 : i32
    %0 = arith.muli %arg0, %c1_i32 : i32
    %1 = arith.addi %0, %arg1 : i32
    %c0_i32 = arith.constant 0 : i32
    %2 = arith.minsi %1, %c0_i32 : i32
    %c0_i32_0 = arith.constant 0 : i32
    %c0_i32_1 = arith.constant 0 : i32
    return %2, %c0_i32_0 : i32, i32
  }
  func.func @transform_1(%arg0: i32, %arg1: i32) -> (i32, i32) {
    %c0_i32 = arith.constant 0 : i32
    %c0_i32_0 = arith.constant 0 : i32
    return %arg0, %c0_i32 : i32, i32
  }
}

</mosaic_0001>

<bundles_post_ra>
// kernel: tpu_custom_call.1
= control target key start
LH: loop header
LB: loop body
LE: loop exit
PB: predicated region body
PF: predicated region fallthrough
CT: control target
= control target key end

     0   :  { %6 = vsyncpa [#allocation3], 0  ;;  %s699_s0 = inlined_call_operand.hbm [shape: f32[16,128], index: 0, kind: input, shape index: {}]   ;;  %s700_s1 = inlined_call_operand.hbm [shape: f32[16,128], index: 1, kind: output, shape index: {}]  }
   0x1   :  { %8 = vsyncpa [#allocation3 + $0x1], 0 }
   0x2   :  { %9 = vsyncpa [#allocation4], 0 }
   0x3   :  { %11 = vsyncpa [#allocation4 + $0x1], 0  ;;  %s537_s6 = smov 0   ;;  %s539_s7 = smov 0  }
   0x4   :  { %s541_s8 = smov 0   ;;  %s543_s9 = smov 0  }
   0x5   :  { %s545_s10 = smov 0   ;;  %s547_s11 = smov 0  }
   0x6   :  { %s549_s12 = smov 0   ;;  %s551_s13 = smov 0  }
   0x7 LB: > { %s279_s14 = sadd.s32 4294967295, %s521_s13   ;;  %s280_s15 = sadd.s32 4294967294, %s521_s13   ;;  %s521_s13 = sphi %s551_s13, %s17_s13   ;;  %s517_s12 = sphi %s549_s12, %s719_s12   ;;  %s513_s11 = sphi %s547_s11, %s718_s11   ;;  %s509_s10 = sphi %s545_s10, %s689_s10   ;;  %s505_s9 = sphi %s543_s9, %s717_s9   ;;  %s501_s8 = sphi %s541_s8, %s716_s8   ;;  %s497_s7 = sphi %s539_s7, %s715_s7   ;;  %s493_s6 = sphi %s537_s6, %s714_s6  }
   0x8   : > { %s29_s16 = sadd.s32 1, %s517_s12  ;;  %p490_p1 = scmp.ne.s32.totalorder %s509_s10, 0 }
   0x9   : > { %p31_p0 = scmp.ge.s32.totalorder %s29_s16, 2  ;;  %p50_p2 = scmp.eq.s32.totalorder %s521_s13, 0 }
   0xa   : > { %p55_p3 = scmp.ne.s32.totalorder %s509_s10, %s505_s9  ;;  %p56_p5 = scmp.eq.s32.totalorder %s279_s14, 0 }
   0xb   : > { %s721_s16 = smov (%p31_p0, %s29_s16), 0  ;;  %p583_p4 = por %p490_p1, %p50_p2 }
   0xc   : > { %p587_p6 = por %p56_p5, %p55_p3  ;;  %s65_s19 = ssub.s32 %s517_s12, %s721_s16 }
   0xd   : > { %p66_p7 = scmp.eq.s32.totalorder %s65_s19, 0  ;;  %s68_s20 = sadd.s32 1, %s501_s8 }
   0xe   : > { %s705_s18 = scalar_select %p587_p6, 1, 0 }
   0xf   : > { %s595_s21 = scalar_select %p66_p7, %s501_s8, %s68_s20  }
  0x10   : > { %p78_p8 = scmp.ne.s32.totalorder %s501_s8, %s497_s7  ;;  %p79_p9 = scmp.eq.s32.totalorder %s279_s14, 1 }
  0x11   : > { %p84_p10 = scmp.ne.s32.totalorder %s497_s7, %s493_s6  ;;  %p85_p11 = scmp.eq.s32.totalorder %s280_s15, 1 }
  0x12   : > { %p601_p12 = por %p79_p9, %p78_p8  ;;  %p307_p1 = scmp.lt.s32.totalorder %s521_s13, 2 }
  0x13   : > { %p606_p0 = por %p85_p11, %p84_p10  ;;  %s523_s24 = smov [#allocation2]  }
  0x14   : > { %s706_s22 = scalar_select %p601_p12, 1, 0 }
  0x15   : > { %s707_s23 = scalar_select %p606_p0, 1, 0 }
  0x16   : > { %s119_s25 = sshll.u32 %s523_s24, 4  ;;  %p613_p2 = pnand %p307_p1, %p583_p4  ;;  %s120_s25 = int_to_ptr.vmem [resolvable:$true] %s119_s25 }
  0x17   : > { %s388_s29 = scalar_lea.hbm %s699_s0, 256 }
  0x18   : > { %s708_s26 = scalar_select %p613_p2, 1, 0 }
  0x19   : > { %p389_p3 = scmp.ne.s32.totalorder %s699_s0, %s388_s29  ;;  %p390_p5 = pneg %p613_p2 }
  0x1a   : > { %p395_p9 = scmp.lt.u32.totalorder %s388_s29, %s388_s29  ;;  %p397_p4 = scmp.lt.u32.totalorder %s388_s29, %s699_s0 }
  0x1b   : > { %p391_p7 = pnand %p390_p5, %p389_p3 }
  0x1c   : > { %p398_p10 = por %p397_p4, %p395_p9 }
  0x1d   : > { %p392_p8 = pneg %p391_p7 }
  0x1f   : > { %p399_p11 = pnand %p398_p10, %p392_p8 }
  0x21   : > { %402 = shalt.err (!%p399_p11)
}
  0x22   : > { %s403_s5 = scalar_lea.vmem %s120_s25, 256  ;;  %s410_s9 = scalar_lea.vmem %s120_s25, 512 }
  0x23   : > { %p404_p1 = scmp.ne.s32.totalorder %s120_s25, %s403_s5  ;;  %p411_p12 = scmp.lt.s32.totalorder %s120_s25, %s120_s25 }
  0x24   : > { %p412_p6 = scmp.lt.s32.totalorder %s410_s9, %s403_s5 }
  0x25   : > { %p406_p13 = pnand %p404_p1, %p390_p5 }
  0x26   : > { %p413_p2 = por %p412_p6, %p411_p12 }
  0x27   : > { %p407_p0 = pneg %p406_p13 }
  0x29   : > { %p414_p3 = pnand %p413_p2, %p407_p0 }
  0x2b   : > { %417 = shalt.err (!%p414_p3)
}
  0x2c   : > { %s524_s14 = smov 128   ;;  %s525_s15 = smov 8  }
  0x2d   : > { %p709_p7 = scmp.ne.s32.totalorder %s708_s26, 0  ;;  %p286_p8 = scmp.ge.s32.totalorder %s521_s13, 1 }
  0x2e   : > { %p127_p9 = scmp.lt.s32.totalorder %s521_s13, 3 }
  0x2f   : > { %302 = dma.hbm_to_vmem [thread:$0]  (!%p709_p7), %s699_s0, 256, %s120_s25, [#allocation3], %s524_s14, %s524_s14, %s525_s15  }
  0x30   : > { %p128_p5 = pnand %p286_p8, %p127_p9 }
  0x31   : > { %s133_s20 = sand.u32 (!%p128_p5), 1, %s509_s10   ;;  %p710_p6 = scmp.ne.s32.totalorder (!%p128_p5), %s705_s18, 0 }
  0x32   : > { %131 = sbr.rel (%p128_p5) target bundleno = 90 (0x5a), region = 24  ;;  %s287_s24 = sshll.u32 (!%p128_p5), %s133_s20, 4 }
  0x33   : > { %s134_s27 = scalar_lea.sflag (!%p128_p5), [#allocation3], %s133_s20  ;;  %s137_s28 = scalar_lea.vmem (!%p128_p5), [#allocation2], %s287_s24 }
  0x39   : > { %483 = dma.done.wait (%p710_p6), %s134_s27, 256  }
  0x3a   : > { %485 = vsyncadd (%p710_p6), %s134_s27, 4294967040  ;;  %v169_v0 = vlaneseq  ;;  %v167_v1 = vld [vmem:[%s137_s28] sm:$0xff]  ;;  %v168_v2 = vld [vmem:[%s137_s28 + $0x8] sm:$0xff]  ;;  %s289_s25 = sshll.u32 %s513_s11, 4  ;;  %s153_s26 = sand.u32 1, %s497_s7  }
  0x3b   : > { %384 = vlog2.f32 %v167_v1  ;;  %v172_v5 = vstv %s289_s25  ;;  %s288_s29 = sshll.u32 %s153_s26, 3  ;;  %s291_s18 = sshll.u32 %s513_s11, 7 }
  0x3c   : > { %v170_v3 = vshrl.u32 %v169_v0, 7  ;;  %386 = vlog2.f32 %v168_v2  ;;  %s155_s30 = scalar_lea.vmem [#allocation5], %s288_s29  ;;  %s646_s5 = scalar_lea.hbm %s700_s1, %s291_s18 }
  0x3d   : > { %s201_s2 = sshll.u32 %s155_s30, 4  ;;  %s188_s9 = scalar_lea.sflag [#allocation4], %s153_s26  ;;  %s648_s2 = int_to_ptr.vmem [resolvable:$true] %s201_s2 }
  0x3e   : > { %v171_v4 = vadd.s32 8, %v170_v3  ;;  %v173_v6 = vadd.s32 %v172_v5, %v170_v3  ;;  %s418_s14 = scalar_lea.vmem %s648_s2, 128  ;;  %p711_p13 = scmp.ne.s32.totalorder %s706_s22, 0 }
  0x3f   : > { %p419_p12 = scmp.ne.s32.totalorder %s648_s2, %s418_s14  ;;  %s526_s11 = smov [#allocation5]  }
  0x40   : > { %v174_v7 = vadd.s32 %v172_v5, %v171_v4  ;;  %vm175_vm0 = vcmp.lt.s32.totalorder %v173_v6, 16  ;;  %s422_s15 = sshll.u32 %s526_s11, 4  ;;  %s423_s15 = int_to_ptr.vmem [resolvable:$false] %s422_s15 }
  0x41   : > { %p420_p0 = pnand %p419_p12, %p711_p13  ;;  %s424_s17 = scalar_lea.vmem %s423_s15, 256 }
  0x42   : > { %vm176_vm1 = vcmp.lt.s32.totalorder %v174_v7, 16  ;;  %p425_p4 = scmp.lt.s32.totalorder %s648_s2, %s423_s15  ;;  %p426_p10 = scmp.lt.s32.totalorder %s424_s17, %s418_s14 }
  0x43   : > { %p421_p2 = pneg %p420_p0 }
  0x44   : > { %p427_p11 = por %p426_p10, %p425_p4 }
  0x45   : > { %v385_v8 = vpop.eup %384 }
  0x46   : > { %v387_v9 = vpop.eup %386  ;;  %v178_v10 = vmul.f32 0.6931472, %v385_v8  ;;  %p428_p1 = pnand %p427_p11, %p421_p2 }
  0x47   : > { %v180_v11 = vmul.f32 0.6931472, %v387_v9 }
  0x48   : > { %v181_v12 = vsel %vm175_vm0, %v178_v10, 0.0 }
  0x49   : > { %v182_v13 = vsel %vm176_vm1, %v180_v11, 0.0 }
  0x4a   : > { %v184_v14 = vadd.f32 %v182_v13, %v181_v12 }
  0x4c   : > { %186 = vst [vmem:[%s155_s30] sm:$0xff] %v184_v14 }
  0x4d   : > { %431 = shalt.err (!%p428_p1)
}
  0x4e   : > { %s432_s19 = scalar_lea.hbm %s646_s5, 128  ;;  %s436_s27 = scalar_lea.hbm %s700_s1, 256 }
  0x4f   : > { %p433_p3 = scmp.ne.s32.totalorder %s646_s5, %s432_s19  ;;  %p437_p9 = scmp.lt.u32.totalorder %s646_s5, %s700_s1 }
  0x50   : > { %p438_p5 = scmp.lt.u32.totalorder %s436_s27, %s432_s19  ;;  %p440_p12 = scmp.lt.u32.totalorder %s432_s19, %s646_s5 }
  0x51   : > { %p434_p7 = pnand %p433_p3, %p711_p13 }
  0x52   : > { %p439_p6 = por %p438_p5, %p437_p9 }
  0x53   : > { %p435_p8 = pneg %p434_p7 }
  0x54   : > { %p441_p0 = por %p440_p12, %p439_p6 }
  0x56   : > { %p442_p2 = pnand %p441_p0, %p435_p8 }
  0x58   : > { %445 = shalt.err (!%p442_p2)
}
  0x59   : > { %297 = dma.vmem_to_hbm [thread:$0]  (%p711_p13), %s648_s2, 128, %s646_s5, %s188_s9  }
  0x5a PF: > { %s213_s26 = sand.u32 1, %s493_s6   ;;  %p712_p4 = scmp.ne.s32.totalorder %s707_s23, 0 }
  0x5b   : > { %p713_p10 = scmp.ge.s32.totalorder %s521_s13, 2  ;;  %s214_s29 = scalar_lea.sflag [#allocation4], %s213_s26 }
  0x5d   : > { %p304_p11 = pnand %p713_p10, %p712_p4 }
  0x5f   : > { %487 = dma.done.wait (!%p304_p11), %s214_s29, 128  }
  0x60   : > { %489 = vsyncadd (!%p304_p11), %s214_s29, 4294967168  ;;  %s17_s13 = sadd.s32 1, %s521_s13   ;;  %s714_s6 = smov %s497_s7 }
  0x61   : > { %p14_p1 = scmp.ge.s32.totalorder %s17_s13, 4   ;;  %s715_s7 = smov %s501_s8 }
  0x62   : > { %s716_s8 = smov %s595_s21  ;;  %s717_s9 = smov %s509_s10 }
  0x63   : > { %s689_s10 = smov 0   ;;  %s718_s11 = smov %s517_s12 }
  0x64   : > { %s719_s12 = smov %s721_s16  ;;  %16 = sbr.rel (!%p14_p1) target bundleno = 7 (0x7), region = 73 }
  0x6b   :  { %219 = vsyncpa [#allocation3], 1 }
  0x6c   :  { %221 = vsyncpa [#allocation3 + $0x1], 1 }
  0x6d   :  { %222 = vsyncpa [#allocation4], 1 }
  0x6e   :  { %224 = vsyncpa [#allocation4 + $0x1], 1 }

</bundles_post_ra>
